<compile_context>
chip_gen: v7x
topology: tpu7x:2x2x1
jax: 0.10.0
libtpu: 0.0.40
codegen_flags: <defaults>
</compile_context>

<pallas_src>
import jax
import jax.numpy as jnp
from jax.experimental import pallas as pl
from jax.experimental.pallas import tpu as pltpu

VOCAB = 16       # input_size
HIDDEN = 32      # hidden_size
MIN_BUCKET = 8   # smallest padded sequence length


def _gru_encoder_kernel(tok_ref, len_ref, emb_ref, h0_ref, w_ref, b_ref,
                        out_ref, hfin_ref, xh_ref):
    # tok_ref : SMEM (T_pad,) int32 token ids (scalar prefetch)
    # len_ref : SMEM (1,)     int32 true sequence length (scalar prefetch)
    # emb_ref : VMEM (VOCAB, 1, H) resident embedding table
    # h0_ref  : VMEM (1, H) initial hidden
    # w_ref   : VMEM (2H, 4H) block-diagonal gate-stacked weights
    #           rows [0:H)   = [W_ih^T_rz | W_ih^T_n | 0      ]
    #           rows [H:2H)  = [W_hh^T_rz | 0        | W_hh^T_n]
    # b_ref   : VMEM (1, 4H) folded biases [b_r+b'_r | b_z+b'_z | b_in | b_hn]
    # out_ref : VMEM (T_pad, 1, H) per-step hidden (== GRU output)
    # hfin_ref: VMEM (1, H) final hidden
    # xh_ref  : VMEM scratch (1, 2H) staging buffer for [x | h]
    H = HIDDEN
    n_steps = len_ref[0]

    # Deterministic contents for padded (unused) rows.
    out_ref[...] = jnp.zeros_like(out_ref)

    # Weights / biases loaded once, live in vregs across all timesteps.
    w = w_ref[...]          # (2H, 4H)
    b = b_ref[...]          # (1, 4H)

    def step(t, h):
        # Gather this step's embedding row from the resident table and stage
        # [x | h] into one lane-contiguous (1, 2H) operand.
        xh_ref[:, :H] = emb_ref[tok_ref[t]]      # (1, H)
        xh_ref[:, H:] = h                        # (1, H)

        # Single fused MXU dot: (1, 2H) x (2H, 4H) -> (1, 4H) full 128-lane vreg.
        g = jnp.dot(xh_ref[...], w, preferred_element_type=jnp.float32) + b
        # g layout: [gi_r+gh_r+b_r | gi_z+gh_z+b_z | gi_n+b_in | gh_n+b_hn]

        rz = jax.nn.sigmoid(g[:, :2 * H])
        r = rz[:, :H]
        z = rz[:, H:]
        n = jnp.tanh(g[:, 2 * H:3 * H] + r * g[:, 3 * H:])
        h_new = (1.0 - z) * n + z * h            # torch GRU update

        out_ref[t] = h_new                       # dynamic leading-dim store
        return h_new

    hfin_ref[...] = jax.lax.fori_loop(0, n_steps, step, h0_ref[...])


def _encoder_seq_impl(tokens_padded, length, hidden, kernel_params):
    emb3, w_big, bias_slab = kernel_params
    H = HIDDEN
    T_pad = tokens_padded.shape[0]
    h0 = hidden.reshape(1, H).astype(jnp.float32)

    grid_spec = pltpu.PrefetchScalarGridSpec(
        num_scalar_prefetch=2,
        grid=(1,),
        in_specs=[
            pl.BlockSpec((VOCAB, 1, H), lambda i, tok, ln: (0, 0, 0)),    # embedding table (resident)
            pl.BlockSpec((1, H), lambda i, tok, ln: (0, 0)),              # h0
            pl.BlockSpec((2 * H, 4 * H), lambda i, tok, ln: (0, 0)),      # fused gate weights
            pl.BlockSpec((1, 4 * H), lambda i, tok, ln: (0, 0)),          # folded biases
        ],
        out_specs=[
            pl.BlockSpec((T_pad, 1, H), lambda i, tok, ln: (0, 0, 0)),    # per-step hidden
            pl.BlockSpec((1, H), lambda i, tok, ln: (0, 0)),              # final hidden
        ],
        scratch_shapes=[pltpu.VMEM((1, 2 * H), jnp.float32)],             # [x | h] staging
    )

    outs, h_final = pl.pallas_call(
        _gru_encoder_kernel,
        grid_spec=grid_spec,
        out_shape=(jax.ShapeDtypeStruct((T_pad, 1, H), jnp.float32),
                   jax.ShapeDtypeStruct((1, H), jnp.float32)),
        compiler_params=pltpu.CompilerParams(
            # The (trivial) grid axis is serial; the recurrence must never be
            # marked "parallel".
            dimension_semantics=("arbitrary",)),
    )(tokens_padded.astype(jnp.int32), length.astype(jnp.int32),
      emb3, h0, w_big, bias_slab)
    return outs, h_final


_encoder_seq_jit = jax.jit(_encoder_seq_impl)


def _bucket_size(t):
    t = max(int(t), 1)
    return max(1 << (t - 1).bit_length(), MIN_BUCKET)


def encoder_forward_seq(tokens, hidden, kernel_params):
    """Run the encoder over a whole token sequence in one kernel launch.

    Returns (outputs (T, 1, H), final_hidden (1, 1, H))."""
    tokens = jnp.asarray(tokens, jnp.int32).reshape(-1)
    T = tokens.shape[0]
    T_pad = _bucket_size(T)                               # bucketed -> few compiles
    tokens_padded = jnp.pad(tokens, (0, T_pad - T))
    length = jnp.array([T], jnp.int32)                    # runtime scalar, not baked in
    outs, h_final = _encoder_seq_jit(tokens_padded, length, hidden, kernel_params)
    return outs[:T], h_final.reshape(1, 1, HIDDEN)


def encoder_forward(token, hidden, kernel_params):
    """Single-step forward matching Encoder.forward(input_tensor, hidden).
    For a 1-step GRU, output == new hidden."""
    _, h_new = encoder_forward_seq(jnp.asarray(token, jnp.int32).reshape(1),
                                   hidden, kernel_params)
    return h_new, h_new


def init_raw_params(key, vocab, hidden):
    """Deterministic synthetic params with the same shapes as nn.Embedding + nn.GRU."""
    k = jax.random.split(key, 5)
    bound = 1.0 / float(hidden) ** 0.5
    emb = jax.random.normal(k[0], (vocab, hidden), jnp.float32)                        # embedding.weight
    w_ih = jax.random.uniform(k[1], (3 * hidden, hidden), jnp.float32, -bound, bound)  # gru.weight_ih_l0
    w_hh = jax.random.uniform(k[2], (3 * hidden, hidden), jnp.float32, -bound, bound)  # gru.weight_hh_l0
    b_ih = jax.random.uniform(k[3], (3 * hidden,), jnp.float32, -bound, bound)         # gru.bias_ih_l0
    b_hh = jax.random.uniform(k[4], (3 * hidden,), jnp.float32, -bound, bound)         # gru.bias_hh_l0
    return emb, w_ih, w_hh, b_ih, b_hh


def to_kernel_params(raw):
    """Pre-pack weights for the kernel: block-diagonal gate-stacked (2H, 4H)
    weight whose 128-lane output is [gi_r+gh_r | gi_z+gh_z | gi_n | gh_n],
    plus the matching folded (1, 4H) bias slab."""
    emb, w_ih, w_hh, b_ih, b_hh = raw
    H = HIDDEN
    emb3 = emb.reshape(VOCAB, 1, H)                       # leading-dim-gatherable layout
    wih_t = w_ih.T                                        # (H, 3H), gate order r, z, n
    whh_t = w_hh.T                                        # (H, 3H)
    zeros = jnp.zeros((H, H), jnp.float32)
    top = jnp.concatenate([wih_t[:, :2 * H], wih_t[:, 2 * H:], zeros], axis=1)   # (H, 4H)
    bot = jnp.concatenate([whh_t[:, :2 * H], zeros, whh_t[:, 2 * H:]], axis=1)   # (H, 4H)
    w_big = jnp.concatenate([top, bot], axis=0)                                   # (2H, 4H) = (64, 128)
    bias_slab = jnp.concatenate(
        [b_ih[:2 * H] + b_hh[:2 * H],     # r, z biases folded together
         b_ih[2 * H:],                    # b_in
         b_hh[2 * H:]],                   # b_hn (separate: n-gate needs r * (.. + b_hn))
        axis=0).reshape(1, 4 * H)
    return emb3, w_big, bias_slab


def reference_forward_seq(tokens, hidden, raw):
    """Pure-JAX reference matching torch.nn.GRU math over a token sequence."""
    emb, w_ih, w_hh, b_ih, b_hh = raw
    H = HIDDEN
    h = hidden.reshape(-1)
    outs = []
    for i in range(tokens.shape[0]):
        x = emb[tokens[i]]
        gi = w_ih @ x + b_ih
        gh = w_hh @ h + b_hh
        r = jax.nn.sigmoid(gi[:H] + gh[:H])
        z = jax.nn.sigmoid(gi[H:2 * H] + gh[H:2 * H])
        n = jnp.tanh(gi[2 * H:] + r * gh[2 * H:])
        h = (1.0 - z) * n + z * h
        outs.append(h)
    return jnp.stack(outs).reshape(-1, 1, H), h.reshape(1, 1, H)


if __name__ == "__main__":
    key = jax.random.PRNGKey(0)
    raw_params = init_raw_params(key, VOCAB, HIDDEN)
    kernel_params = to_kernel_params(raw_params)

    hidden0 = jnp.zeros((1, 1, HIDDEN), jnp.float32)      # Encoder.init_hidden()

    # Full-sequence recurrence: all T steps in ONE pallas_call.
    T = 8
    tokens = jax.random.randint(jax.random.PRNGKey(1), (T,), 0, VOCAB, dtype=jnp.int32)
    outs, h_fin = encoder_forward_seq(tokens, hidden0, kernel_params)
    outs = jax.block_until_ready(outs)
    h_fin = jax.block_until_ready(h_fin)
    ref_outs, ref_hid = reference_forward_seq(tokens, hidden0, raw_params)
    assert outs.shape == (T, 1, HIDDEN)
    assert jnp.allclose(outs, ref_outs, atol=1e-5, rtol=1e-5)
    assert jnp.allclose(h_fin, ref_hid, atol=1e-5, rtol=1e-5)

    # Ragged length (T=5) reuses the same T_pad=8 compilation (length is runtime data).
    T2 = 5
    tokens2 = jax.random.randint(jax.random.PRNGKey(2), (T2,), 0, VOCAB, dtype=jnp.int32)
    outs2, h_fin2 = encoder_forward_seq(tokens2, hidden0, kernel_params)
    outs2 = jax.block_until_ready(outs2)
    ref_outs2, ref_hid2 = reference_forward_seq(tokens2, hidden0, raw_params)
    assert outs2.shape == (T2, 1, HIDDEN)
    assert jnp.allclose(outs2, ref_outs2, atol=1e-5, rtol=1e-5)
    assert jnp.allclose(h_fin2, ref_hid2, atol=1e-5, rtol=1e-5)

    # Single-step path matching the original Encoder.forward(input_tensor, hidden).
    out1, hid1 = encoder_forward(jnp.int32(3), hidden0, kernel_params)
    out1 = jax.block_until_ready(out1)
    hid1 = jax.block_until_ready(hid1)
    ref_o1, ref_h1 = reference_forward_seq(jnp.array([3], jnp.int32), hidden0, raw_params)
    assert out1.shape == (1, 1, HIDDEN) and hid1.shape == (1, 1, HIDDEN)
    assert jnp.allclose(out1, ref_o1.reshape(1, 1, HIDDEN), atol=1e-5, rtol=1e-5)
    assert jnp.allclose(hid1, ref_h1, atol=1e-5, rtol=1e-5)

    print("KERNEL_OK")
</pallas_src>

<mosaic_0001>
module attributes {stable_mosaic.version = 11 : i64} {
  func.func @_gru_encoder_kernel(%arg0: i32, %arg1: memref<8xi32, #tpu.memory_space<smem>>, %arg2: memref<1xi32, #tpu.memory_space<smem>>, %arg3: memref<16x1x32xf32, #tpu.memory_space<vmem>>, %arg4: memref<1x32xf32, #tpu.memory_space<vmem>>, %arg5: memref<64x128xf32, #tpu.memory_space<vmem>>, %arg6: memref<1x128xf32, #tpu.memory_space<vmem>>, %arg7: memref<8x1x32xf32, #tpu.memory_space<vmem>>, %arg8: memref<1x32xf32, #tpu.memory_space<vmem>>, %arg9: memref<1x64xf32, #tpu.memory_space<vmem>>) attributes {dimension_semantics = [#tpu.dimension_semantics<arbitrary>], iteration_bounds = array<i64: 1>, scalar_prefetch = 2 : i64, scratch_operands = 1 : i64, tpu.core_type = #tpu.core_type<tc>, window_params = [{pipeline_mode = #tpu.pipeline_mode<synchronous>, transform_indices = @transform_0, window_bounds = array<i64: 16, 1, 32>}, {pipeline_mode = #tpu.pipeline_mode<synchronous>, transform_indices = @transform_1, window_bounds = array<i64: 1, 32>}, {pipeline_mode = #tpu.pipeline_mode<synchronous>, transform_indices = @transform_2, window_bounds = array<i64: 64, 128>}, {pipeline_mode = #tpu.pipeline_mode<synchronous>, transform_indices = @transform_3, window_bounds = array<i64: 1, 128>}, {pipeline_mode = #tpu.pipeline_mode<synchronous>, transform_indices = @transform_4, window_bounds = array<i64: 8, 1, 32>}, {pipeline_mode = #tpu.pipeline_mode<synchronous>, transform_indices = @transform_5, window_bounds = array<i64: 1, 32>}]} {
    %c0 = arith.constant 0 : index
    %0 = memref.load %arg2[%c0] : memref<1xi32, #tpu.memory_space<smem>>
    %cst = arith.constant 0.000000e+00 : f32
    %1 = vector.broadcast %cst : f32 to vector<8x1x32xf32>
    %c0_0 = arith.constant 0 : index
    %c0_1 = arith.constant 0 : index
    %c0_2 = arith.constant 0 : index
    %2 = vector.load %arg7[%c0_0, %c0_1, %c0_2] : memref<8x1x32xf32, #tpu.memory_space<vmem>>, vector<8x1x32xf32>
    tpu.vector_store %arg7[%c0_0, %c0_1, %c0_2], %1 {strides = array<i32>} : memref<8x1x32xf32, #tpu.memory_space<vmem>>, vector<8x1x32xf32>,
    %c0_3 = arith.constant 0 : index
    %c0_4 = arith.constant 0 : index
    %3 = vector.load %arg5[%c0_3, %c0_4] : memref<64x128xf32, #tpu.memory_space<vmem>>, vector<64x128xf32>
    %c0_5 = arith.constant 0 : index
    %c0_6 = arith.constant 0 : index
    %4 = vector.load %arg6[%c0_5, %c0_6] : memref<1x128xf32, #tpu.memory_space<vmem>>, vector<1x128xf32>
    %c0_7 = arith.constant 0 : index
    %c0_8 = arith.constant 0 : index
    %5 = vector.load %arg4[%c0_7, %c0_8] : memref<1x32xf32, #tpu.memory_space<vmem>>, vector<1x32xf32>
    %c0_i32 = arith.constant 0 : i32
    %6 = arith.subi %0, %c0_i32 : i32
    %7 = arith.addi %c0_i32, %6 : i32
    %c1_i32 = arith.constant 1 : i32
    %8 = scf.for %arg10 = %c0_i32 to %7 step %c1_i32 iter_args(%arg11 = %5) -> (vector<1x32xf32>)  : i32 {
      %10 = arith.index_cast %arg10 : i32 to index
      %11 = memref.load %arg1[%10] : memref<8xi32, #tpu.memory_space<smem>>
      %12 = arith.index_cast %11 : i32 to index
      %c0_11 = arith.constant 0 : index
      %c0_12 = arith.constant 0 : index
      %13 = vector.load %arg3[%12, %c0_11, %c0_12] : memref<16x1x32xf32, #tpu.memory_space<vmem>>, vector<1x1x32xf32>
      %14 = vector.shape_cast %13 : vector<1x1x32xf32> to vector<1x32xf32>
      %c0_13 = arith.constant 0 : index
      %c0_14 = arith.constant 0 : index
      %15 = vector.load %arg9[%c0_13, %c0_14] : memref<1x64xf32, #tpu.memory_space<vmem>>, vector<1x32xf32>
      tpu.vector_store %arg9[%c0_13, %c0_14], %14 {strides = array<i32>} : memref<1x64xf32, #tpu.memory_space<vmem>>, vector<1x32xf32>,
      %c0_15 = arith.constant 0 : index
      %c32 = arith.constant 32 : index
      %16 = vector.load %arg9[%c0_15, %c32] : memref<1x64xf32, #tpu.memory_space<vmem>>, vector<1x32xf32>
      tpu.vector_store %arg9[%c0_15, %c32], %arg11 {strides = array<i32>} : memref<1x64xf32, #tpu.memory_space<vmem>>, vector<1x32xf32>,
      %c0_16 = arith.constant 0 : index
      %c0_17 = arith.constant 0 : index
      %17 = vector.load %arg9[%c0_16, %c0_17] : memref<1x64xf32, #tpu.memory_space<vmem>>, vector<1x64xf32>
      %cst_18 = arith.constant dense<0.000000e+00> : vector<1x128xf32>
      %18 = tpu.matmul %17, %3, %cst_18 {dimension_numbers = #tpu.dot_dimension_numbers<[1], [0], [0], [1], [0, 0, 1, 1], [], []>} : vector<1x64xf32>, vector<64x128xf32>, vector<1x128xf32> -> vector<1x128xf32>
      %19 = arith.addf %18, %4 : vector<1x128xf32>
      %20 = vector.extract_strided_slice %19 {offsets = [0, 0], sizes = [1, 64], strides = [1, 1]} : vector<1x128xf32> to vector<1x64xf32>
      %21 = arith.negf %20 : vector<1x64xf32>
      %22 = math.exp %21 : vector<1x64xf32>
      %cst_19 = arith.constant 1.000000e+00 : f32
      %23 = vector.broadcast %cst_19 : f32 to vector<1x64xf32>
      %24 = arith.addf %23, %22 : vector<1x64xf32>
      %25 = arith.divf %23, %24 : vector<1x64xf32>
      %26 = vector.extract_strided_slice %25 {offsets = [0, 0], sizes = [1, 32], strides = [1, 1]} : vector<1x64xf32> to vector<1x32xf32>
      %27 = vector.extract_strided_slice %25 {offsets = [0, 32], sizes = [1, 32], strides = [1, 1]} : vector<1x64xf32> to vector<1x32xf32>
      %28 = vector.extract_strided_slice %19 {offsets = [0, 64], sizes = [1, 32], strides = [1, 1]} : vector<1x128xf32> to vector<1x32xf32>
      %29 = vector.extract_strided_slice %19 {offsets = [0, 96], sizes = [1, 32], strides = [1, 1]} : vector<1x128xf32> to vector<1x32xf32>
      %30 = arith.mulf %26, %29 : vector<1x32xf32>
      %31 = arith.addf %28, %30 : vector<1x32xf32>
      %32 = math.tanh %31 : vector<1x32xf32>
      %cst_20 = arith.constant 1.000000e+00 : f32
      %33 = vector.broadcast %cst_20 : f32 to vector<1x32xf32>
      %34 = arith.subf %33, %27 : vector<1x32xf32>
      %35 = arith.mulf %34, %32 : vector<1x32xf32>
      %36 = arith.mulf %27, %arg11 : vector<1x32xf32>
      %37 = arith.addf %35, %36 : vector<1x32xf32>
      %38 = arith.index_cast %arg10 : i32 to index
      %c0_21 = arith.constant 0 : index
      %c0_22 = arith.constant 0 : index
      %39 = vector.load %arg7[%38, %c0_21, %c0_22] : memref<8x1x32xf32, #tpu.memory_space<vmem>>, vector<1x1x32xf32>
      %40 = vector.shape_cast %39 : vector<1x1x32xf32> to vector<1x32xf32>
      %41 = vector.shape_cast %37 : vector<1x32xf32> to vector<1x1x32xf32>
      tpu.vector_store %arg7[%38, %c0_21, %c0_22], %41 {strides = array<i32>} : memref<8x1x32xf32, #tpu.memory_space<vmem>>, vector<1x1x32xf32>,
      scf.yield %37 : vector<1x32xf32>
    }
    %c0_9 = arith.constant 0 : index
    %c0_10 = arith.constant 0 : index
    %9 = vector.load %arg8[%c0_9, %c0_10] : memref<1x32xf32, #tpu.memory_space<vmem>>, vector<1x32xf32>
    tpu.vector_store %arg8[%c0_9, %c0_10], %8 {strides = array<i32>} : memref<1x32xf32, #tpu.memory_space<vmem>>, vector<1x32xf32>,
    return
  }
  func.func @transform_0(%arg0: i32, %arg1: memref<8xi32, #tpu.memory_space<smem>>, %arg2: memref<1xi32, #tpu.memory_space<smem>>) -> (i32, i32, i32) {
    %c0_i32 = arith.constant 0 : i32
    %c0_i32_0 = arith.constant 0 : i32
    %c0_i32_1 = arith.constant 0 : i32
    %c0_i32_2 = arith.constant 0 : i32
    return %c0_i32, %c0_i32_0, %c0_i32_1 : i32, i32, i32
  }
  func.func @transform_1(%arg0: i32, %arg1: memref<8xi32, #tpu.memory_space<smem>>, %arg2: memref<1xi32, #tpu.memory_space<smem>>) -> (i32, i32) {
    %c0_i32 = arith.constant 0 : i32
    %c0_i32_0 = arith.constant 0 : i32
    %c0_i32_1 = arith.constant 0 : i32
    return %c0_i32, %c0_i32_0 : i32, i32
  }
  func.func @transform_2(%arg0: i32, %arg1: memref<8xi32, #tpu.memory_space<smem>>, %arg2: memref<1xi32, #tpu.memory_space<smem>>) -> (i32, i32) {
    %c0_i32 = arith.constant 0 : i32
    %c0_i32_0 = arith.constant 0 : i32
    %c0_i32_1 = arith.constant 0 : i32
    return %c0_i32, %c0_i32_0 : i32, i32
  }
  func.func @transform_3(%arg0: i32, %arg1: memref<8xi32, #tpu.memory_space<smem>>, %arg2: memref<1xi32, #tpu.memory_space<smem>>) -> (i32, i32) {
    %c0_i32 = arith.constant 0 : i32
    %c0_i32_0 = arith.constant 0 : i32
    %c0_i32_1 = arith.constant 0 : i32
    return %c0_i32, %c0_i32_0 : i32, i32
  }
  func.func @transform_4(%arg0: i32, %arg1: memref<8xi32, #tpu.memory_space<smem>>, %arg2: memref<1xi32, #tpu.memory_space<smem>>) -> (i32, i32, i32) {
    %c0_i32 = arith.constant 0 : i32
    %c0_i32_0 = arith.constant 0 : i32
    %c0_i32_1 = arith.constant 0 : i32
    %c0_i32_2 = arith.constant 0 : i32
    return %c0_i32, %c0_i32_0, %c0_i32_1 : i32, i32, i32
  }
  func.func @transform_5(%arg0: i32, %arg1: memref<8xi32, #tpu.memory_space<smem>>, %arg2: memref<1xi32, #tpu.memory_space<smem>>) -> (i32, i32) {
    %c0_i32 = arith.constant 0 : i32
    %c0_i32_0 = arith.constant 0 : i32
    %c0_i32_1 = arith.constant 0 : i32
    return %c0_i32, %c0_i32_0 : i32, i32
  }
}

</mosaic_0001>

<bundles_post_ra>
// kernel: _encoder_seq_impl.1
= control target key start
LH: loop header
LB: loop body
LE: loop exit
PB: predicated region body
PF: predicated region fallthrough
CT: control target
= control target key end

     0   :  { %s650_s0 = inlined_call_operand.vmem [shape: s32[8], index: 0, kind: input, shape index: {}]   ;;  %s651_s1 = inlined_call_operand.<no memory space> [shape: s32[1], index: 1, kind: input, shape index: {}]   ;;  %s652_s2 = inlined_call_operand.hbm [shape: f32[16,1,32], index: 2, kind: input, shape index: {}]   ;;  %s653_s3 = inlined_call_operand.vmem [shape: f32[1,32], index: 3, kind: input, shape index: {}]   ;;  %s654_s4 = inlined_call_operand.hbm [shape: f32[64,128], index: 4, kind: input, shape index: {}]   ;;  %s655_s5 = inlined_call_operand.vmem [shape: f32[1,128], index: 5, kind: input, shape index: {}]   ;;  %s656_s6 = inlined_call_operand.hbm [shape: f32[8,1,32], index: 6, kind: output, shape index: {0}]   ;;  %s657_s7 = inlined_call_operand.hbm [shape: f32[1,32], index: 7, kind: output, shape index: {1}]  }
   0x1   :  { %s13_s26 = sshll.u32 %s650_s0, 4  ;;  %s14_s26 = int_to_ptr.vmem [resolvable:$true] %s13_s26 }
   0x2   :  { %s333_s27 = scalar_lea.vmem %s14_s26, 16  ;;  %p338_p1 = scmp.lt.s32.totalorder %s14_s26, %s14_s26 }
   0x3   :  { %p334_p0 = scmp.ne.s32.totalorder %s14_s26, %s333_s27  ;;  %p339_p2 = scmp.lt.s32.totalorder %s333_s27, %s333_s27 }
   0x5   :  { %p340_p3 = por %p339_p2, %p338_p1 }
   0x7   :  { %p341_p4 = pnand %p340_p3, %p334_p0 }
   0x9   :  { %344 = shalt.err (!%p341_p4)  }
   0xa   :  { %s467_s28 = smov [#allocation4]  }
   0xb   :  { %16 = dma.vmem_to_smem %s14_s26, 16, %s467_s28, [#allocation3] }
   0xc   :  { %445 = dma.done.wait [#allocation3], 16 }
   0xd   :  { %446 = vsyncadd [#allocation3], 4294967280 }
   0xe   :  { %19 = sfence }
   0xf   :  { %20 = vsyncpa [#allocation7], 0 }
  0x10   :  { %21 = vsyncpa [#allocation10], 0 }
  0x11   :  { %22 = vsyncpa [#allocation8], 0 }
  0x12   :  { %23 = vsyncpa [#allocation13], 0  ;;  %s468_s29 = smov [#allocation6]   ;;  %s345_s9 = scalar_lea.hbm %s652_s2, 256 }
  0x13   :  { %s29_s30 = sshll.u32 %s468_s29, 4  ;;  %p346_p5 = scmp.ne.s32.totalorder %s652_s2, %s345_s9  ;;  %s30_s30 = int_to_ptr.vmem [resolvable:$true] %s29_s30 }
  0x14   :  { %p349_p6 = scmp.lt.u32.totalorder %s345_s9, %s652_s2 }
  0x16   :  { %p351_p7 = pnand %p349_p6, %p346_p5 }
  0x18   :  { %354 = shalt.err (!%p351_p7)
}
  0x19   :  { %s355_s14 = scalar_lea.vmem %s30_s30, 256  ;;  %p360_p9 = scmp.lt.s32.totalorder %s30_s30, %s30_s30 }
  0x1a   :  { %p356_p8 = scmp.ne.s32.totalorder %s30_s30, %s355_s14  ;;  %p361_p10 = scmp.lt.s32.totalorder %s355_s14, %s355_s14 }
  0x1c   :  { %p362_p11 = por %p361_p10, %p360_p9 }
  0x1e   :  { %p363_p12 = pnand %p362_p11, %p356_p8 }
  0x20   :  { %366 = shalt.err (!%p363_p12)
}
  0x21   :  { %s469_s15 = smov 16   ;;  %s470_s16 = smov 1  }
  0x22   :  { %35 = dma.hbm_to_vmem [thread:$0]  %s652_s2, 256, %s30_s30, [#allocation7], %s469_s15, %s469_s15, %s470_s16  }
  0x23   :  { %s471_s19 = smov [#allocation9]   ;;  %s367_s23 = scalar_lea.hbm %s654_s4, 1024 }
  0x24   :  { %s43_s20 = sshll.u32 %s471_s19, 4  ;;  %p368_p13 = scmp.ne.s32.totalorder %s654_s4, %s367_s23  ;;  %s44_s20 = int_to_ptr.vmem [resolvable:$true] %s43_s20 }
  0x25   :  { %p371_p0 = scmp.lt.u32.totalorder %s367_s23, %s654_s4 }
  0x27   :  { %p373_p1 = pnand %p371_p0, %p368_p13 }
  0x29   :  { %376 = shalt.err (!%p373_p1)
}
  0x2a   :  { %s377_s28 = scalar_lea.vmem %s44_s20, 1024  ;;  %p382_p3 = scmp.lt.s32.totalorder %s44_s20, %s44_s20 }
  0x2b   :  { %p378_p2 = scmp.ne.s32.totalorder %s44_s20, %s377_s28  ;;  %p383_p4 = scmp.lt.s32.totalorder %s377_s28, %s377_s28 }
  0x2d   :  { %p384_p5 = por %p383_p4, %p382_p3 }
  0x2f   :  { %p385_p6 = pnand %p384_p5, %p378_p2 }
  0x31   :  { %388 = shalt.err (!%p385_p6)
}
  0x32   :  { %s472_s2 = smov 128   ;;  %s473_s29 = smov 8  }
  0x33   :  { %49 = dma.hbm_to_vmem [thread:$0]  %s654_s4, 1024, %s44_s20, [#allocation10], %s472_s2, %s472_s2, %s473_s29  }
  0x34   :  { %447 = dma.done.wait [#allocation7], 256  }
  0x35   :  { %448 = vsyncadd [#allocation7], 4294967040 }
  0x36   :  { %449 = dma.done.wait [#allocation10], 1024  }
  0x37   :  { %450 = vsyncadd [#allocation10], 4294966272  ;;  %vm59_vm0 = vcmask 253952   ;;  %v474_v0 = vmov 0.0   ;;  %v561_v1 = vld [vmem:[#allocation9] sm:$0xff]  ;;  %v563_v2 = vld [vmem:[#allocation9 + $0x8] sm:$0xff] }
  0x38   :  { %60 = vst.msk [vmem:[#allocation11] sm:$0x1] %vm59_vm0, %v474_v0  ;;  %61 = vst.msk [vmem:[#allocation11 + $0x1] sm:$0x1] %vm59_vm0, %v474_v0  ;;  %v565_v3 = vld [vmem:[#allocation9 + $0x10] sm:$0xff]  ;;  %v567_v4 = vld [vmem:[#allocation9 + $0x18] sm:$0xff] }
  0x39   :  { %62 = vst.msk [vmem:[#allocation11 + $0x2] sm:$0x1] %vm59_vm0, %v474_v0  ;;  %63 = vst.msk [vmem:[#allocation11 + $0x3] sm:$0x1] %vm59_vm0, %v474_v0  ;;  %v569_v5 = vld [vmem:[#allocation9 + $0x20] sm:$0xff]  ;;  %v571_v6 = vld [vmem:[#allocation9 + $0x28] sm:$0xff] }
  0x3a   :  { %64 = vst.msk [vmem:[#allocation11 + $0x4] sm:$0x1] %vm59_vm0, %v474_v0  ;;  %65 = vst.msk [vmem:[#allocation11 + $0x5] sm:$0x1] %vm59_vm0, %v474_v0  ;;  %v573_v7 = vld [vmem:[#allocation9 + $0x30] sm:$0xff]  ;;  %v575_v8 = vld [vmem:[#allocation9 + $0x38] sm:$0xff] }
  0x3b   :  { %66 = vst.msk [vmem:[#allocation11 + $0x6] sm:$0x1] %vm59_vm0, %v474_v0  ;;  %67 = vst.msk [vmem:[#allocation11 + $0x7] sm:$0x1] %vm59_vm0, %v474_v0  ;;  %v580_v9 = vld [vmem:[%s655_s5] sm:$0x1] }
  0x3c   :  { %v77_v10 = vld [vmem:[%s653_s3] sm:$0x1]   ;;  %p244_p7 = scmp.le.s32.totalorder %s651_s1, 0 }
  0x3d   :  { %v658_v11 = vmov %v77_v10  ;;  %s592_s13 = smov (!%p244_p7), 0  }
  0x3e   :  { %239 = sbr.rel (%p244_p7) target bundleno = 887 (0x377), region = 55 }
  0x45 LB: > { %v276_v12 = vpack.c.bf16 %v563_v2, %v561_v1  ;;  %v475_v13 = vmov 0.0|0.0   ;;  %s476_s3 = smov 32   ;;  %v279_v14 = vpack.c.bf16 %v567_v4, %v565_v3  ;;  %s85_s5 = sld [smem:[#allocation4 + %s461_s13]]  ;;  %vm477_vm1 = vmmov 0   ;;  %s461_s13 = sphi %s592_s13, %s81_s13   ;;  %v457_v10 = vphi %v77_v10, %v659_v10  }
  0x46   : > { %275 = vmatprep.subr.bf16.mxu0 %v475_v13  ;;  %90 = vrot.lane.b32.xlu0 %v457_v10, %s476_s3  ;;  %v478_v15 = vmov 0.0   ;;  %v282_v16 = vpack.c.bf16 %v571_v6, %v569_v5  ;;  %v285_v18 = vpack.c.bf16 %v575_v8, %v573_v7  ;;  %vm93_vm2 = vcmask 516352   ;;  %s479_s17 = smov 64   ;;  %s480_s18 = smov 96  }
  0x47   : > { %277 = vmatpush3.bf16.msra.mxu0 %v276_v12  ;;  %272 = vmatprep.mubr.msk.f32.mxu0 %vm477_vm1, %v478_v15  ;;  %vm96_vm3 = vcmask 523264   ;;  %s199_s19 = scalar_lea.vmem [#allocation11], %s461_s13  ;;  %s81_s13 = sadd.s32 1, %s461_s13  }
  0x48   : > { %278 = vmatprep.subr.bf16.mxu0 %v475_v13  ;;  %p80_p8 = scmp.ge.s32.totalorder %s81_s13, %s651_s1 }
  0x4b   : > { %280 = vmatpush3.bf16.msra.mxu0 %v279_v14  ;;  %s86_s14 = scalar_lea.vmem [#allocation6], %s85_s5 }
  0x4c   : > { %281 = vmatprep.subr.bf16.mxu0 %v475_v13  ;;  %v87_v17 = vld [vmem:[%s86_s14] sm:$0x1] }
  0x4d   : > { %88 = vst.msk [vmem:[#allocation2] sm:$0x1] %vm59_vm0, %v87_v17 }
  0x4f   : > { %283 = vmatpush3.bf16.msra.mxu0 %v282_v16 }
  0x50   : > { %284 = vmatprep.subr.bf16.mxu0 %v475_v13 }
  0x53   : > { %286 = vmatpush3.bf16.msra.mxu0 %v285_v18 }
  0xb8   : > { %v91_v19 = vpop.permute.xlu0 %90 }
  0xb9   : > { %94 = vst.msk [vmem:[#allocation2] sm:$0x1] %vm93_vm2, %v91_v19 }
  0xc0   : > { %v95_v20 = vld [vmem:[#allocation2] sm:$0x1] }
  0xc1   : > { %273 = vmatmul.mubr.msk.f32.vlgmr.msra.gmra.mrb[0].mxu0 %vm96_vm3, %v95_v20 }
 0x194   : > { %v166_v21 = vpop.f32.mrb[0].mxu0 }
 0x195   : > { %v167_v22 = vadd.f32 %v166_v21, %v580_v9  ;;  %v274_v23 = vpop.f32.mrb[1].mxu0 }
 0x197   : > { %177 = vrot.lane.b32.xlu0 %v167_v22, %s476_s3  ;;  %v246_v24 = vmul.f32 -1.442695, %v167_v22 }
 0x199   : > { %327 = vpow2.f32 %v246_v24 }
 0x1a3   : > { %v328_v25 = vpop.eup %327 }
 0x1a4   : > { %v173_v26 = vadd.f32 1.0, %v328_v25 }
 0x1a6   : > { %329 = vrcp.f32 %v173_v26 }
 0x1b0   : > { %v330_v27 = vpop.eup %329 }
 0x1b1   : > { %v187_v33 = vsub.f32 1.0, %v330_v27  ;;  %v193_v35 = vmul.f32 %v330_v27, %v91_v19 }
 0x209   : > { %v178_v28 = vpop.permute.xlu0 %177 }
 0x20a   : > { %v180_v29 = vmul.f32 %v330_v27, %v178_v28 }
 0x20c   : > { %182 = vrot.lane.b32.xlu1 %v180_v29, %s479_s17 }
 0x27e   : > { %v183_v30 = vpop.permute.xlu1 %182 }
 0x27f   : > { %v185_v31 = vadd.f32 %v183_v30, %v167_v22 }
 0x281   : > { %331 = vtanh.f32 %v185_v31 }
 0x28b   : > { %v332_v32 = vpop.eup %331 }
 0x28c   : > { %189 = vrot.lane.b32.xlu1 %v332_v32, %s480_s18 }
 0x2fe   : > { %v190_v34 = vpop.permute.xlu1 %189 }
 0x2ff   : > { %v192_v36 = vmul.f32 %v190_v34, %v187_v33 }
 0x301   : > { %v194_v37 = vadd.f32 %v193_v35, %v192_v36 }
 0x303   : > { %196 = vrot.lane.b32.xlu0 %v194_v37, %s480_s18 }
 0x370   :  { %83 = sbr.rel (!%p80_p8) target bundleno = 69 (0x45), region = 61 }
 0x375   : > { %v197_v38 = vpop.permute.xlu0 %196  }
 0x376   : > { %200 = vst.msk [vmem:[%s199_s19] sm:$0x1] %vm59_vm0, %v197_v38  ;;  %v659_v10 = vmov %v197_v38  ;;  %v660_v11 = vmov (%p80_p8), %v197_v38 }
 0x377 PF:  { %201 = vst.msk [vmem:[#allocation12] sm:$0x1] %vm59_vm0, %v465_v11  ;;  %s481_s22 = smov [#allocation11]   ;;  %s482_s24 = smov [#allocation12]   ;;  %v465_v11 = vphi %v658_v11, %v660_v11  }
 0x378   :  { %s207_s23 = sshll.u32 %s481_s22, 4  ;;  %s220_s25 = sshll.u32 %s482_s24, 4  ;;  %s208_s23 = int_to_ptr.vmem [resolvable:$true] %s207_s23  ;;  %s221_s25 = int_to_ptr.vmem [resolvable:$true] %s220_s25 }
 0x379   :  { %s389_s26 = scalar_lea.vmem %s208_s23, 128  ;;  %p394_p10 = scmp.lt.s32.totalorder %s208_s23, %s208_s23 }
 0x37a   :  { %p390_p9 = scmp.ne.s32.totalorder %s208_s23, %s389_s26  ;;  %p395_p11 = scmp.lt.s32.totalorder %s389_s26, %s389_s26 }
 0x37c   :  { %p396_p12 = por %p395_p11, %p394_p10 }
 0x37e   :  { %p397_p13 = pnand %p396_p12, %p390_p9 }
 0x380   :  { %400 = shalt.err (!%p397_p13)
}
 0x381   :  { %s401_s28 = scalar_lea.hbm %s656_s6, 128 }
 0x382   :  { %p402_p0 = scmp.ne.s32.totalorder %s656_s6, %s401_s28  ;;  %p405_p1 = scmp.lt.u32.totalorder %s401_s28, %s656_s6 }
 0x384   :  { %p407_p2 = pnand %p405_p1, %p402_p0 }
 0x386   :  { %410 = shalt.err (!%p407_p2)
}
 0x387   :  { %213 = dma.vmem_to_hbm [thread:$0]  %s208_s23, 128, %s656_s6, [#allocation8], %s469_s15, %s469_s15, %s470_s16  }
 0x388   :  { %s411_s9 = scalar_lea.vmem %s221_s25, 16  ;;  %s415_s10 = scalar_lea.vmem %s221_s25, 32 }
 0x389   :  { %p412_p3 = scmp.ne.s32.totalorder %s221_s25, %s411_s9  ;;  %p416_p4 = scmp.lt.s32.totalorder %s221_s25, %s221_s25 }
 0x38a   :  { %p417_p5 = scmp.lt.s32.totalorder %s415_s10, %s411_s9 }
 0x38c   :  { %p418_p6 = por %p417_p5, %p416_p4 }
 0x38e   :  { %p419_p7 = pnand %p418_p6, %p412_p3 }
 0x390   :  { %422 = shalt.err (!%p419_p7)
}
 0x391   :  { %s423_s13 = scalar_lea.hbm %s657_s7, 16 }
 0x392   :  { %p424_p8 = scmp.ne.s32.totalorder %s657_s7, %s423_s13  ;;  %p427_p9 = scmp.lt.u32.totalorder %s423_s13, %s657_s7 }
 0x394   :  { %p429_p10 = pnand %p427_p9, %p424_p8 }
 0x396   :  { %432 = shalt.err (!%p429_p10)
}
 0x397   :  { %223 = dma.vmem_to_hbm [thread:$0]  %s221_s25, 16, %s657_s7, [#allocation13]  }
 0x398   :  { %451 = dma.done.wait [#allocation8], 128  }
 0x399   :  { %452 = vsyncadd [#allocation8], 4294967168 }
 0x39a   :  { %453 = dma.done.wait [#allocation13], 16  }
 0x39b   :  { %454 = vsyncadd [#allocation13], 4294967280 }
 0x39c   :  { %230 = vsyncpa [#allocation7], 1 }
 0x39d   :  { %231 = vsyncpa [#allocation10], 1 }
 0x39e   :  { %232 = vsyncpa [#allocation8], 1 }
 0x39f   :  { %233 = vsyncpa [#allocation13], 1 }

</bundles_post_ra>
